<compile_context>
chip_gen: v7x
topology: tpu7x:2x2x1
jax: 0.10.0
libtpu: 0.0.40
codegen_flags: <defaults>
</compile_context>

<pallas_src>
import functools

import jax
import jax.numpy as jnp
import numpy as np
from jax.experimental import pallas as pl
from jax.experimental.pallas import tpu as pltpu


def _shufflenet_block_kernel(x1_hbm, x2_ref, w1_ref, b1_ref, w2_ref, b2_ref,
                             w3_ref, b3_ref, mask_ref, out_ref, dma_sem,
                             *, H, W, Bt):
    """Fused per batch chunk (Bt batch elements packed on the lane axis):
       1x1 conv+BN+ReLU (MXU) -> 3x3 depthwise conv+BN (VPU/XLU) -> 1x1 conv+BN+ReLU (MXU)
       -> concat([x1, branch]) + ChannelShuffle(groups=2) fused into the store layout.

    Ref shapes:
      x1_hbm (B, Cc, HW) in HBM (pl.ANY), x2 (Cc, Bt*HW),
      w1/w3 (Cc, Cc), w2 (9, Cc, 1), b* (Cc, 1), mask (9, 1, Bt*HW),
      out (Bt, Cc, 2*HW).
    """
    HW = H * W
    i = pl.program_id(0)

    # x1 pass-through is pure data movement: DMA it straight from HBM into the first half
    # of the output block so it overlaps the branch compute and never uses vld/vst slots.
    x1_copy = pltpu.make_async_copy(
        x1_hbm.at[pl.ds(i * Bt, Bt)],
        out_ref.at[:, :, pl.ds(0, HW)],
        dma_sem)
    x1_copy.start()

    x2 = x2_ref[...].astype(jnp.float32)                      # (Cc, Bt*HW)

    # ---- conv1: 1x1 pointwise + folded BN + ReLU (MXU matmul) ---------------
    h1 = jnp.dot(w1_ref[...], x2, preferred_element_type=jnp.float32)
    h1 = jnp.maximum(h1 + b1_ref[...], 0.0)                   # (Cc, Bt*HW)

    # ---- conv2: 3x3 depthwise, stride 1, padding 1 + folded BN (no act) -----
    # All channels at once: channels on sublanes, batch*spatial on lanes.  The rolls go to
    # the XLU (hide under MXU time); boundary masks are precomputed in the wrapper and also
    # zero out any roll that crosses a batch-element boundary.
    acc = h1 * w2_ref[4]                                      # center tap (always valid)
    idx = 0
    for dy in (-1, 0, 1):
        for dx in (-1, 0, 1):
            if dy == 0 and dx == 0:
                idx += 1
                continue
            shift = dy * W + dx
            tap = jnp.roll(h1, -shift, axis=1) * mask_ref[idx]
            acc = acc + tap * w2_ref[idx]
            idx += 1
    h2 = acc + b2_ref[...]                                    # (Cc, Bt*HW)

    # ---- conv3: 1x1 pointwise + folded BN + ReLU (MXU matmul) ---------------
    y2 = jnp.dot(w3_ref[...], h2, preferred_element_type=jnp.float32)
    y2 = jnp.maximum(y2 + b3_ref[...], 0.0)                   # (Cc, Bt*HW)

    # ---- concat + ChannelShuffle(groups=2) via the output layout ------------
    #   out[b, k, 0:HW]    -> shuffled output channel 2k   (x1 pass-through, written by DMA)
    #   out[b, k, HW:2*HW] -> shuffled output channel 2k+1 (branch)
    for j in range(Bt):
        out_ref[j, :, HW:2 * HW] = y2[:, j * HW:(j + 1) * HW].astype(out_ref.dtype)

    x1_copy.wait()


def _choose_bt(B, HW, target_lanes=2048):
    """Largest batch-chunk that keeps the lane width within target while leaving grid >= 2."""
    divs = [d for d in range(1, B + 1) if B % d == 0]
    bt = max([d for d in divs if d * HW <= target_lanes] or [1])
    if B > 1:
        bt = max([d for d in divs if d <= bt and B // d >= 2] or [1])
    return bt


def shufflenet_block(x, w1, b1, w2, b2, w3, b3):
    """x: (B, C, H, W).  w1/w3: (C//2, C//2), w2: (C//2, 9), b*: (C//2,)  (BN folded)."""
    B, C, H, W = x.shape
    Cc = C // 2
    HW = H * W
    assert HW % 128 == 0, "H*W must be a multiple of 128 (see TODO for general spatial sizes)"
    dtype = x.dtype

    Cc_pad = ((Cc + 7) // 8) * 8          # sublane-align channels (f32)
    pc = Cc_pad - Cc
    Bt = _choose_bt(B, HW)
    Nt = Bt * HW
    G = B // Bt

    # Split / pad / lay out inputs.
    x1 = x[:, :Cc].reshape(B, Cc, HW)
    x2 = x[:, Cc:].reshape(B, Cc, HW)
    if pc:
        x1 = jnp.pad(x1, ((0, 0), (0, pc), (0, 0)))
        x2 = jnp.pad(x2, ((0, 0), (0, pc), (0, 0)))
        w1 = jnp.pad(w1, ((0, pc), (0, pc)))
        w3 = jnp.pad(w3, ((0, pc), (0, pc)))
        w2 = jnp.pad(w2, ((0, pc), (0, 0)))
        b1 = jnp.pad(b1, ((0, pc),))
        b2 = jnp.pad(b2, ((0, pc),))
        b3 = jnp.pad(b3, ((0, pc),))
    # Lane-dense branch input: (Cc_pad, B*HW).
    x2_2d = jnp.transpose(x2, (1, 0, 2)).reshape(Cc_pad, B * HW)
    b1 = b1.reshape(Cc_pad, 1)
    b2 = b2.reshape(Cc_pad, 1)
    b3 = b3.reshape(Cc_pad, 1)
    # Pre-split depthwise taps: (9, Cc_pad, 1) so the kernel never does lane extracts.
    w2_taps = jnp.transpose(w2)[:, :, None]

    # Grid-invariant boundary masks for the 9 depthwise taps (computed once, host-side).
    pos = np.arange(Nt) % HW
    hh = pos // W
    ww = pos % W
    rows = []
    for dy in (-1, 0, 1):
        for dx in (-1, 0, 1):
            rows.append(((hh + dy >= 0) & (hh + dy < H) &
                         (ww + dx >= 0) & (ww + dx < W)).astype(np.float32))
    mask = jnp.asarray(np.stack(rows)).reshape(9, 1, Nt)

    kernel = functools.partial(_shufflenet_block_kernel, H=H, W=W, Bt=Bt)

    def resident(shape):
        return pl.BlockSpec(shape, lambda i: (0,) * len(shape))

    out = pl.pallas_call(
        kernel,
        out_shape=jax.ShapeDtypeStruct((B, Cc_pad, 2 * HW), dtype),
        grid_spec=pltpu.PrefetchScalarGridSpec(
            num_scalar_prefetch=0,
            grid=(G,),
            in_specs=[
                pl.BlockSpec(memory_space=pl.ANY),               # x1 stays in HBM (DMA'd)
                pl.BlockSpec((Cc_pad, Nt), lambda i: (0, i)),    # x2 (lane-packed batch chunk)
                resident((Cc_pad, Cc_pad)),                      # w1 (VMEM-resident)
                resident((Cc_pad, 1)),                           # b1
                resident((9, Cc_pad, 1)),                        # w2 taps
                resident((Cc_pad, 1)),                           # b2
                resident((Cc_pad, Cc_pad)),                      # w3
                resident((Cc_pad, 1)),                           # b3
                resident((9, 1, Nt)),                            # depthwise boundary masks
            ],
            out_specs=pl.BlockSpec((Bt, Cc_pad, 2 * HW), lambda i: (i, 0, 0)),
            scratch_shapes=[pltpu.SemaphoreType.DMA],
        ),
        compiler_params=pltpu.CompilerParams(
            dimension_semantics=("parallel",)),
    )(x1, x2_2d, w1, b1, w2_taps, b2, w3, b3, mask)

    # Crop padded channels; the contiguous reshape then realizes the channel shuffle.
    out = out[:, :Cc]
    return out.reshape(B, C, H, W)


# ------------------------- pure-JAX reference (eval-mode BN) -----------------
def _bn_eval(h, gamma, beta, mean, var, eps=1e-5):
    return ((h - mean[None, :, None, None]) /
            jnp.sqrt(var + eps)[None, :, None, None] *
            gamma[None, :, None, None] + beta[None, :, None, None])


def ref_forward(x, p):
    Cc = x.shape[1] // 2
    x1, x2 = x[:, :Cc], x[:, Cc:]
    dn = ('NCHW', 'OIHW', 'NCHW')

    h = jax.lax.conv_general_dilated(x2, p['w1'], (1, 1), 'VALID',
                                     dimension_numbers=dn)
    h = h + p['cb1'][None, :, None, None]
    h = jax.nn.relu(_bn_eval(h, p['g1'], p['be1'], p['m1'], p['v1']))

    h = jax.lax.conv_general_dilated(h, p['w2'], (1, 1), ((1, 1), (1, 1)),
                                     feature_group_count=Cc,
                                     dimension_numbers=dn)
    h = h + p['cb2'][None, :, None, None]
    h = _bn_eval(h, p['g2'], p['be2'], p['m2'], p['v2'])

    h = jax.lax.conv_general_dilated(h, p['w3'], (1, 1), 'VALID',
                                     dimension_numbers=dn)
    h = h + p['cb3'][None, :, None, None]
    h = jax.nn.relu(_bn_eval(h, p['g3'], p['be3'], p['m3'], p['v3']))

    y = jnp.concatenate([x1, h], axis=1)
    B, C, H, W = y.shape
    y = y.reshape(B, 2, C // 2, H, W).transpose(0, 2, 1, 3, 4).reshape(B, C, H, W)
    return y


if __name__ == "__main__":
    B, C, H, W = 2, 4, 16, 16
    Cc = C // 2
    ks = jax.random.split(jax.random.PRNGKey(0), 10)

    x = jax.random.normal(ks[0], (B, C, H, W), jnp.float32)

    def bn_params(k):
        k1, k2, k3, k4 = jax.random.split(k, 4)
        gamma = jax.random.uniform(k1, (Cc,), jnp.float32, 0.5, 1.5)
        beta = jax.random.normal(k2, (Cc,), jnp.float32) * 0.1
        mean = jax.random.normal(k3, (Cc,), jnp.float32) * 0.1
        var = jax.random.uniform(k4, (Cc,), jnp.float32, 0.5, 1.5)
        return gamma, beta, mean, var

    # conv1 (1x1), conv2 (3x3 depthwise), conv3 (1x1) — shapes as in the module
    w1 = jax.random.normal(ks[1], (Cc, Cc, 1, 1), jnp.float32) * 0.4
    cb1 = jax.random.normal(ks[2], (Cc,), jnp.float32) * 0.1
    g1, be1, m1, v1 = bn_params(ks[3])

    w2 = jax.random.normal(ks[4], (Cc, 1, 3, 3), jnp.float32) * 0.4
    cb2 = jax.random.normal(ks[5], (Cc,), jnp.float32) * 0.1
    g2, be2, m2, v2 = bn_params(ks[6])

    w3 = jax.random.normal(ks[7], (Cc, Cc, 1, 1), jnp.float32) * 0.4
    cb3 = jax.random.normal(ks[8], (Cc,), jnp.float32) * 0.1
    g3, be3, m3, v3 = bn_params(ks[9])

    # Fold eval-mode BatchNorm into the conv weights / biases for the kernel.
    eps = 1e-5

    def fold(w, cb, g, be, m, v):
        s = g / jnp.sqrt(v + eps)
        wf = w * s.reshape((-1,) + (1,) * (w.ndim - 1))
        bf = (cb - m) * s + be
        return wf, bf

    w1f, b1f = fold(w1, cb1, g1, be1, m1, v1)
    w2f, b2f = fold(w2, cb2, g2, be2, m2, v2)
    w3f, b3f = fold(w3, cb3, g3, be3, m3, v3)

    y = shufflenet_block(x,
                         w1f.reshape(Cc, Cc), b1f,
                         w2f.reshape(Cc, 9), b2f,
                         w3f.reshape(Cc, Cc), b3f)
    jax.block_until_ready(y)

    params = dict(w1=w1, cb1=cb1, g1=g1, be1=be1, m1=m1, v1=v1,
                  w2=w2, cb2=cb2, g2=g2, be2=be2, m2=m2, v2=v2,
                  w3=w3, cb3=cb3, g3=g3, be3=be3, m3=m3, v3=v3)
    y_ref = ref_forward(x, params)

    np.testing.assert_allclose(np.asarray(y), np.asarray(y_ref),
                               rtol=1e-5, atol=1e-5)
    print("KERNEL_OK")
</pallas_src>

<mosaic_0001>
module attributes {stable_mosaic.version = 11 : i64} {
  func.func @_shufflenet_block_kernel(%arg0: i32, %arg1: memref<2x8x256xf32, #tpu.memory_space<any>>, %arg2: memref<8x256xf32, #tpu.memory_space<vmem>>, %arg3: memref<8x8xf32, #tpu.memory_space<vmem>>, %arg4: memref<8x1xf32, #tpu.memory_space<vmem>>, %arg5: memref<9x8x1xf32, #tpu.memory_space<vmem>>, %arg6: memref<8x1xf32, #tpu.memory_space<vmem>>, %arg7: memref<8x8xf32, #tpu.memory_space<vmem>>, %arg8: memref<8x1xf32, #tpu.memory_space<vmem>>, %arg9: memref<9x1x256xf32, #tpu.memory_space<vmem>>, %arg10: memref<1x8x512xf32, #tpu.memory_space<vmem>>, %arg11: memref<!tpu.dma_semaphore, #tpu.memory_space<semaphore_mem>>) attributes {dimension_semantics = [#tpu.dimension_semantics<parallel>], iteration_bounds = array<i64: 2>, scalar_prefetch = 0 : i64, scratch_operands = 1 : i64, tpu.core_type = #tpu.core_type<tc>, window_params = [{}, {transform_indices = @transform_1, window_bounds = array<i64: 8, 256>}, {pipeline_mode = #tpu.pipeline_mode<synchronous>, transform_indices = @transform_2, window_bounds = array<i64: 8, 8>}, {pipeline_mode = #tpu.pipeline_mode<synchronous>, transform_indices = @transform_3, window_bounds = array<i64: 8, 1>}, {pipeline_mode = #tpu.pipeline_mode<synchronous>, transform_indices = @transform_4, window_bounds = array<i64: 9, 8, 1>}, {pipeline_mode = #tpu.pipeline_mode<synchronous>, transform_indices = @transform_5, window_bounds = array<i64: 8, 1>}, {pipeline_mode = #tpu.pipeline_mode<synchronous>, transform_indices = @transform_6, window_bounds = array<i64: 8, 8>}, {pipeline_mode = #tpu.pipeline_mode<synchronous>, transform_indices = @transform_7, window_bounds = array<i64: 8, 1>}, {pipeline_mode = #tpu.pipeline_mode<synchronous>, transform_indices = @transform_8, window_bounds = array<i64: 9, 1, 256>}, {transform_indices = @transform_9, window_bounds = array<i64: 1, 8, 512>}]} {
    %c1_i32 = arith.constant 1 : i32
    %0 = arith.muli %arg0, %c1_i32 : i32
    %c0_i32 = arith.constant 0 : i32
    %c0_i32_0 = arith.constant 0 : i32
    %1 = tpu.memref_slice %arg1[%0, %c0_i32, %c0_i32_0] : memref<2x8x256xf32, #tpu.memory_space<any>> -> memref<1x8x256xf32, #tpu.memory_space<any>>
    %c0_i32_1 = arith.constant 0 : i32
    %c0_i32_2 = arith.constant 0 : i32
    %c0_i32_3 = arith.constant 0 : i32
    %2 = tpu.memref_slice %arg10[%c0_i32_1, %c0_i32_2, %c0_i32_3] : memref<1x8x512xf32, #tpu.memory_space<vmem>> -> memref<1x8x256xf32, #tpu.memory_space<vmem>>
    tpu.enqueue_dma source(%1 : memref<1x8x256xf32, #tpu.memory_space<any>>) target(%2 : memref<1x8x256xf32, #tpu.memory_space<vmem>>) target_semaphore(%arg11 : memref<!tpu.dma_semaphore, #tpu.memory_space<semaphore_mem>>)
    %c0 = arith.constant 0 : index
    %c0_4 = arith.constant 0 : index
    %3 = vector.load %arg2[%c0, %c0_4] : memref<8x256xf32, #tpu.memory_space<vmem>>, vector<8x256xf32>
    %c0_5 = arith.constant 0 : index
    %c0_6 = arith.constant 0 : index
    %4 = vector.load %arg3[%c0_5, %c0_6] : memref<8x8xf32, #tpu.memory_space<vmem>>, vector<8x8xf32>
    %cst = arith.constant dense<0.000000e+00> : vector<8x256xf32>
    %5 = tpu.matmul %4, %3, %cst {dimension_numbers = #tpu.dot_dimension_numbers<[1], [0], [0], [1], [0, 0, 1, 1], [], []>} : vector<8x8xf32>, vector<8x256xf32>, vector<8x256xf32> -> vector<8x256xf32>
    %c0_7 = arith.constant 0 : index
    %c0_8 = arith.constant 0 : index
    %6 = vector.load %arg4[%c0_7, %c0_8] : memref<8x1xf32, #tpu.memory_space<vmem>>, vector<8x1xf32>
    %7 = vector.broadcast %6 : vector<8x1xf32> to vector<8x256xf32>
    %8 = arith.addf %5, %7 : vector<8x256xf32>
    %cst_9 = arith.constant 0.000000e+00 : f32
    %9 = vector.broadcast %cst_9 : f32 to vector<8x256xf32>
    %10 = arith.maximumf %8, %9 : vector<8x256xf32>
    %c4 = arith.constant 4 : index
    %c0_10 = arith.constant 0 : index
    %c0_11 = arith.constant 0 : index
    %11 = vector.load %arg5[%c4, %c0_10, %c0_11] : memref<9x8x1xf32, #tpu.memory_space<vmem>>, vector<1x8x1xf32>
    %12 = vector.shape_cast %11 : vector<1x8x1xf32> to vector<8x1xf32>
    %13 = vector.broadcast %12 : vector<8x1xf32> to vector<8x256xf32>
    %14 = arith.mulf %10, %13 : vector<8x256xf32>
    %15 = vector.extract_strided_slice %10 {offsets = [0, 239], sizes = [8, 17], strides = [1, 1]} : vector<8x256xf32> to vector<8x17xf32>
    %16 = vector.extract_strided_slice %10 {offsets = [0, 0], sizes = [8, 239], strides = [1, 1]} : vector<8x256xf32> to vector<8x239xf32>
    %17 = tpu.concatenate %15, %16 in 1 : vector<8x17xf32>, vector<8x239xf32> -> vector<8x256xf32>
    %c0_12 = arith.constant 0 : index
    %c0_13 = arith.constant 0 : index
    %c0_14 = arith.constant 0 : index
    %18 = vector.load %arg9[%c0_12, %c0_13, %c0_14] : memref<9x1x256xf32, #tpu.memory_space<vmem>>, vector<1x1x256xf32>
    %19 = vector.shape_cast %18 : vector<1x1x256xf32> to vector<1x256xf32>
    %20 = vector.broadcast %19 : vector<1x256xf32> to vector<8x256xf32>
    %21 = arith.mulf %17, %20 : vector<8x256xf32>
    %c0_15 = arith.constant 0 : index
    %c0_16 = arith.constant 0 : index
    %c0_17 = arith.constant 0 : index
    %22 = vector.load %arg5[%c0_15, %c0_16, %c0_17] : memref<9x8x1xf32, #tpu.memory_space<vmem>>, vector<1x8x1xf32>
    %23 = vector.shape_cast %22 : vector<1x8x1xf32> to vector<8x1xf32>
    %24 = vector.broadcast %23 : vector<8x1xf32> to vector<8x256xf32>
    %25 = arith.mulf %21, %24 : vector<8x256xf32>
    %26 = arith.addf %14, %25 : vector<8x256xf32>
    %27 = vector.extract_strided_slice %10 {offsets = [0, 240], sizes = [8, 16], strides = [1, 1]} : vector<8x256xf32> to vector<8x16xf32>
    %28 = vector.extract_strided_slice %10 {offsets = [0, 0], sizes = [8, 240], strides = [1, 1]} : vector<8x256xf32> to vector<8x240xf32>
    %29 = tpu.concatenate %27, %28 in 1 : vector<8x16xf32>, vector<8x240xf32> -> vector<8x256xf32>
    %c1 = arith.constant 1 : index
    %c0_18 = arith.constant 0 : index
    %c0_19 = arith.constant 0 : index
    %30 = vector.load %arg9[%c1, %c0_18, %c0_19] : memref<9x1x256xf32, #tpu.memory_space<vmem>>, vector<1x1x256xf32>
    %31 = vector.shape_cast %30 : vector<1x1x256xf32> to vector<1x256xf32>
    %32 = vector.broadcast %31 : vector<1x256xf32> to vector<8x256xf32>
    %33 = arith.mulf %29, %32 : vector<8x256xf32>
    %c1_20 = arith.constant 1 : index
    %c0_21 = arith.constant 0 : index
    %c0_22 = arith.constant 0 : index
    %34 = vector.load %arg5[%c1_20, %c0_21, %c0_22] : memref<9x8x1xf32, #tpu.memory_space<vmem>>, vector<1x8x1xf32>
    %35 = vector.shape_cast %34 : vector<1x8x1xf32> to vector<8x1xf32>
    %36 = vector.broadcast %35 : vector<8x1xf32> to vector<8x256xf32>
    %37 = arith.mulf %33, %36 : vector<8x256xf32>
    %38 = arith.addf %26, %37 : vector<8x256xf32>
    %39 = vector.extract_strided_slice %10 {offsets = [0, 241], sizes = [8, 15], strides = [1, 1]} : vector<8x256xf32> to vector<8x15xf32>
    %40 = vector.extract_strided_slice %10 {offsets = [0, 0], sizes = [8, 241], strides = [1, 1]} : vector<8x256xf32> to vector<8x241xf32>
    %41 = tpu.concatenate %39, %40 in 1 : vector<8x15xf32>, vector<8x241xf32> -> vector<8x256xf32>
    %c2 = arith.constant 2 : index
    %c0_23 = arith.constant 0 : index
    %c0_24 = arith.constant 0 : index
    %42 = vector.load %arg9[%c2, %c0_23, %c0_24] : memref<9x1x256xf32, #tpu.memory_space<vmem>>, vector<1x1x256xf32>
    %43 = vector.shape_cast %42 : vector<1x1x256xf32> to vector<1x256xf32>
    %44 = vector.broadcast %43 : vector<1x256xf32> to vector<8x256xf32>
    %45 = arith.mulf %41, %44 : vector<8x256xf32>
    %c2_25 = arith.constant 2 : index
    %c0_26 = arith.constant 0 : index
    %c0_27 = arith.constant 0 : index
    %46 = vector.load %arg5[%c2_25, %c0_26, %c0_27] : memref<9x8x1xf32, #tpu.memory_space<vmem>>, vector<1x8x1xf32>
    %47 = vector.shape_cast %46 : vector<1x8x1xf32> to vector<8x1xf32>
    %48 = vector.broadcast %47 : vector<8x1xf32> to vector<8x256xf32>
    %49 = arith.mulf %45, %48 : vector<8x256xf32>
    %50 = arith.addf %38, %49 : vector<8x256xf32>
    %51 = vector.extract_strided_slice %10 {offsets = [0, 255], sizes = [8, 1], strides = [1, 1]} : vector<8x256xf32> to vector<8x1xf32>
    %52 = vector.extract_strided_slice %10 {offsets = [0, 0], sizes = [8, 255], strides = [1, 1]} : vector<8x256xf32> to vector<8x255xf32>
    %53 = tpu.concatenate %51, %52 in 1 : vector<8x1xf32>, vector<8x255xf32> -> vector<8x256xf32>
    %c3 = arith.constant 3 : index
    %c0_28 = arith.constant 0 : index
    %c0_29 = arith.constant 0 : index
    %54 = vector.load %arg9[%c3, %c0_28, %c0_29] : memref<9x1x256xf32, #tpu.memory_space<vmem>>, vector<1x1x256xf32>
    %55 = vector.shape_cast %54 : vector<1x1x256xf32> to vector<1x256xf32>
    %56 = vector.broadcast %55 : vector<1x256xf32> to vector<8x256xf32>
    %57 = arith.mulf %53, %56 : vector<8x256xf32>
    %c3_30 = arith.constant 3 : index
    %c0_31 = arith.constant 0 : index
    %c0_32 = arith.constant 0 : index
    %58 = vector.load %arg5[%c3_30, %c0_31, %c0_32] : memref<9x8x1xf32, #tpu.memory_space<vmem>>, vector<1x8x1xf32>
    %59 = vector.shape_cast %58 : vector<1x8x1xf32> to vector<8x1xf32>
    %60 = vector.broadcast %59 : vector<8x1xf32> to vector<8x256xf32>
    %61 = arith.mulf %57, %60 : vector<8x256xf32>
    %62 = arith.addf %50, %61 : vector<8x256xf32>
    %63 = vector.extract_strided_slice %10 {offsets = [0, 1], sizes = [8, 255], strides = [1, 1]} : vector<8x256xf32> to vector<8x255xf32>
    %64 = vector.extract_strided_slice %10 {offsets = [0, 0], sizes = [8, 1], strides = [1, 1]} : vector<8x256xf32> to vector<8x1xf32>
    %65 = tpu.concatenate %63, %64 in 1 : vector<8x255xf32>, vector<8x1xf32> -> vector<8x256xf32>
    %c5 = arith.constant 5 : index
    %c0_33 = arith.constant 0 : index
    %c0_34 = arith.constant 0 : index
    %66 = vector.load %arg9[%c5, %c0_33, %c0_34] : memref<9x1x256xf32, #tpu.memory_space<vmem>>, vector<1x1x256xf32>
    %67 = vector.shape_cast %66 : vector<1x1x256xf32> to vector<1x256xf32>
    %68 = vector.broadcast %67 : vector<1x256xf32> to vector<8x256xf32>
    %69 = arith.mulf %65, %68 : vector<8x256xf32>
    %c5_35 = arith.constant 5 : index
    %c0_36 = arith.constant 0 : index
    %c0_37 = arith.constant 0 : index
    %70 = vector.load %arg5[%c5_35, %c0_36, %c0_37] : memref<9x8x1xf32, #tpu.memory_space<vmem>>, vector<1x8x1xf32>
    %71 = vector.shape_cast %70 : vector<1x8x1xf32> to vector<8x1xf32>
    %72 = vector.broadcast %71 : vector<8x1xf32> to vector<8x256xf32>
    %73 = arith.mulf %69, %72 : vector<8x256xf32>
    %74 = arith.addf %62, %73 : vector<8x256xf32>
    %75 = vector.extract_strided_slice %10 {offsets = [0, 15], sizes = [8, 241], strides = [1, 1]} : vector<8x256xf32> to vector<8x241xf32>
    %76 = vector.extract_strided_slice %10 {offsets = [0, 0], sizes = [8, 15], strides = [1, 1]} : vector<8x256xf32> to vector<8x15xf32>
    %77 = tpu.concatenate %75, %76 in 1 : vector<8x241xf32>, vector<8x15xf32> -> vector<8x256xf32>
    %c6 = arith.constant 6 : index
    %c0_38 = arith.constant 0 : index
    %c0_39 = arith.constant 0 : index
    %78 = vector.load %arg9[%c6, %c0_38, %c0_39] : memref<9x1x256xf32, #tpu.memory_space<vmem>>, vector<1x1x256xf32>
    %79 = vector.shape_cast %78 : vector<1x1x256xf32> to vector<1x256xf32>
    %80 = vector.broadcast %79 : vector<1x256xf32> to vector<8x256xf32>
    %81 = arith.mulf %77, %80 : vector<8x256xf32>
    %c6_40 = arith.constant 6 : index
    %c0_41 = arith.constant 0 : index
    %c0_42 = arith.constant 0 : index
    %82 = vector.load %arg5[%c6_40, %c0_41, %c0_42] : memref<9x8x1xf32, #tpu.memory_space<vmem>>, vector<1x8x1xf32>
    %83 = vector.shape_cast %82 : vector<1x8x1xf32> to vector<8x1xf32>
    %84 = vector.broadcast %83 : vector<8x1xf32> to vector<8x256xf32>
    %85 = arith.mulf %81, %84 : vector<8x256xf32>
    %86 = arith.addf %74, %85 : vector<8x256xf32>
    %87 = vector.extract_strided_slice %10 {offsets = [0, 16], sizes = [8, 240], strides = [1, 1]} : vector<8x256xf32> to vector<8x240xf32>
    %88 = vector.extract_strided_slice %10 {offsets = [0, 0], sizes = [8, 16], strides = [1, 1]} : vector<8x256xf32> to vector<8x16xf32>
    %89 = tpu.concatenate %87, %88 in 1 : vector<8x240xf32>, vector<8x16xf32> -> vector<8x256xf32>
    %c7 = arith.constant 7 : index
    %c0_43 = arith.constant 0 : index
    %c0_44 = arith.constant 0 : index
    %90 = vector.load %arg9[%c7, %c0_43, %c0_44] : memref<9x1x256xf32, #tpu.memory_space<vmem>>, vector<1x1x256xf32>
    %91 = vector.shape_cast %90 : vector<1x1x256xf32> to vector<1x256xf32>
    %92 = vector.broadcast %91 : vector<1x256xf32> to vector<8x256xf32>
    %93 = arith.mulf %89, %92 : vector<8x256xf32>
    %c7_45 = arith.constant 7 : index
    %c0_46 = arith.constant 0 : index
    %c0_47 = arith.constant 0 : index
    %94 = vector.load %arg5[%c7_45, %c0_46, %c0_47] : memref<9x8x1xf32, #tpu.memory_space<vmem>>, vector<1x8x1xf32>
    %95 = vector.shape_cast %94 : vector<1x8x1xf32> to vector<8x1xf32>
    %96 = vector.broadcast %95 : vector<8x1xf32> to vector<8x256xf32>
    %97 = arith.mulf %93, %96 : vector<8x256xf32>
    %98 = arith.addf %86, %97 : vector<8x256xf32>
    %99 = vector.extract_strided_slice %10 {offsets = [0, 17], sizes = [8, 239], strides = [1, 1]} : vector<8x256xf32> to vector<8x239xf32>
    %100 = vector.extract_strided_slice %10 {offsets = [0, 0], sizes = [8, 17], strides = [1, 1]} : vector<8x256xf32> to vector<8x17xf32>
    %101 = tpu.concatenate %99, %100 in 1 : vector<8x239xf32>, vector<8x17xf32> -> vector<8x256xf32>
    %c8 = arith.constant 8 : index
    %c0_48 = arith.constant 0 : index
    %c0_49 = arith.constant 0 : index
    %102 = vector.load %arg9[%c8, %c0_48, %c0_49] : memref<9x1x256xf32, #tpu.memory_space<vmem>>, vector<1x1x256xf32>
    %103 = vector.shape_cast %102 : vector<1x1x256xf32> to vector<1x256xf32>
    %104 = vector.broadcast %103 : vector<1x256xf32> to vector<8x256xf32>
    %105 = arith.mulf %101, %104 : vector<8x256xf32>
    %c8_50 = arith.constant 8 : index
    %c0_51 = arith.constant 0 : index
    %c0_52 = arith.constant 0 : index
    %106 = vector.load %arg5[%c8_50, %c0_51, %c0_52] : memref<9x8x1xf32, #tpu.memory_space<vmem>>, vector<1x8x1xf32>
    %107 = vector.shape_cast %106 : vector<1x8x1xf32> to vector<8x1xf32>
    %108 = vector.broadcast %107 : vector<8x1xf32> to vector<8x256xf32>
    %109 = arith.mulf %105, %108 : vector<8x256xf32>
    %110 = arith.addf %98, %109 : vector<8x256xf32>
    %c0_53 = arith.constant 0 : index
    %c0_54 = arith.constant 0 : index
    %111 = vector.load %arg6[%c0_53, %c0_54] : memref<8x1xf32, #tpu.memory_space<vmem>>, vector<8x1xf32>
    %112 = vector.broadcast %111 : vector<8x1xf32> to vector<8x256xf32>
    %113 = arith.addf %110, %112 : vector<8x256xf32>
    %c0_55 = arith.constant 0 : index
    %c0_56 = arith.constant 0 : index
    %114 = vector.load %arg7[%c0_55, %c0_56] : memref<8x8xf32, #tpu.memory_space<vmem>>, vector<8x8xf32>
    %cst_57 = arith.constant dense<0.000000e+00> : vector<8x256xf32>
    %115 = tpu.matmul %114, %113, %cst_57 {dimension_numbers = #tpu.dot_dimension_numbers<[1], [0], [0], [1], [0, 0, 1, 1], [], []>} : vector<8x8xf32>, vector<8x256xf32>, vector<8x256xf32> -> vector<8x256xf32>
    %c0_58 = arith.constant 0 : index
    %c0_59 = arith.constant 0 : index
    %116 = vector.load %arg8[%c0_58, %c0_59] : memref<8x1xf32, #tpu.memory_space<vmem>>, vector<8x1xf32>
    %117 = vector.broadcast %116 : vector<8x1xf32> to vector<8x256xf32>
    %118 = arith.addf %115, %117 : vector<8x256xf32>
    %cst_60 = arith.constant 0.000000e+00 : f32
    %119 = vector.broadcast %cst_60 : f32 to vector<8x256xf32>
    %120 = arith.maximumf %118, %119 : vector<8x256xf32>
    %c0_61 = arith.constant 0 : index
    %c0_62 = arith.constant 0 : index
    %c256 = arith.constant 256 : index
    %121 = vector.load %arg10[%c0_61, %c0_62, %c256] : memref<1x8x512xf32, #tpu.memory_space<vmem>>, vector<1x8x256xf32>
    %122 = vector.shape_cast %121 : vector<1x8x256xf32> to vector<8x256xf32>
    %123 = vector.shape_cast %120 : vector<8x256xf32> to vector<1x8x256xf32>
    tpu.vector_store %arg10[%c0_61, %c0_62, %c256], %123 {strides = array<i32>} : memref<1x8x512xf32, #tpu.memory_space<vmem>>, vector<1x8x256xf32>,
    %c0_i32_63 = arith.constant 0 : i32
    %c0_i32_64 = arith.constant 0 : i32
    %124 = tpu.memref_slice %arg1[%0, %c0_i32_63, %c0_i32_64] : memref<2x8x256xf32, #tpu.memory_space<any>> -> memref<1x8x256xf32, #tpu.memory_space<any>>
    %c0_i32_65 = arith.constant 0 : i32
    %c0_i32_66 = arith.constant 0 : i32
    %c0_i32_67 = arith.constant 0 : i32
    %125 = tpu.memref_slice %arg10[%c0_i32_65, %c0_i32_66, %c0_i32_67] : memref<1x8x512xf32, #tpu.memory_space<vmem>> -> memref<1x8x256xf32, #tpu.memory_space<vmem>>
    tpu.wait_dma2 semaphore(%arg11 : memref<!tpu.dma_semaphore, #tpu.memory_space<semaphore_mem>>) src(%124 : memref<1x8x256xf32, #tpu.memory_space<any>>) dst(%125 : memref<1x8x256xf32, #tpu.memory_space<vmem>>)
    return
  }
  func.func @transform_1(%arg0: i32) -> (i32, i32) {
    %c0_i32 = arith.constant 0 : i32
    %c0_i32_0 = arith.constant 0 : i32
    return %c0_i32, %arg0 : i32, i32
  }
  func.func @transform_2(%arg0: i32) -> (i32, i32) {
    %c0_i32 = arith.constant 0 : i32
    %c0_i32_0 = arith.constant 0 : i32
    %c0_i32_1 = arith.constant 0 : i32
    return %c0_i32, %c0_i32_0 : i32, i32
  }
  func.func @transform_3(%arg0: i32) -> (i32, i32) {
    %c0_i32 = arith.constant 0 : i32
    %c0_i32_0 = arith.constant 0 : i32
    %c0_i32_1 = arith.constant 0 : i32
    return %c0_i32, %c0_i32_0 : i32, i32
  }
  func.func @transform_4(%arg0: i32) -> (i32, i32, i32) {
    %c0_i32 = arith.constant 0 : i32
    %c0_i32_0 = arith.constant 0 : i32
    %c0_i32_1 = arith.constant 0 : i32
    %c0_i32_2 = arith.constant 0 : i32
    return %c0_i32, %c0_i32_0, %c0_i32_1 : i32, i32, i32
  }
  func.func @transform_5(%arg0: i32) -> (i32, i32) {
    %c0_i32 = arith.constant 0 : i32
    %c0_i32_0 = arith.constant 0 : i32
    %c0_i32_1 = arith.constant 0 : i32
    return %c0_i32, %c0_i32_0 : i32, i32
  }
  func.func @transform_6(%arg0: i32) -> (i32, i32) {
    %c0_i32 = arith.constant 0 : i32
    %c0_i32_0 = arith.constant 0 : i32
    %c0_i32_1 = arith.constant 0 : i32
    return %c0_i32, %c0_i32_0 : i32, i32
  }
  func.func @transform_7(%arg0: i32) -> (i32, i32) {
    %c0_i32 = arith.constant 0 : i32
    %c0_i32_0 = arith.constant 0 : i32
    %c0_i32_1 = arith.constant 0 : i32
    return %c0_i32, %c0_i32_0 : i32, i32
  }
  func.func @transform_8(%arg0: i32) -> (i32, i32, i32) {
    %c0_i32 = arith.constant 0 : i32
    %c0_i32_0 = arith.constant 0 : i32
    %c0_i32_1 = arith.constant 0 : i32
    %c0_i32_2 = arith.constant 0 : i32
    return %c0_i32, %c0_i32_0, %c0_i32_1 : i32, i32, i32
  }
  func.func @transform_9(%arg0: i32) -> (i32, i32, i32) {
    %c0_i32 = arith.constant 0 : i32
    %c0_i32_0 = arith.constant 0 : i32
    %c0_i32_1 = arith.constant 0 : i32
    return %arg0, %c0_i32, %c0_i32_0 : i32, i32, i32
  }
}

</mosaic_0001>

<bundles_post_ra>
// kernel: tpu_custom_call.1
= control target key start
LH: loop header
LB: loop body
LE: loop exit
PB: predicated region body
PF: predicated region fallthrough
CT: control target
= control target key end

     0   :  { %14 = vsyncpa [#allocation4], 0  ;;  %s1397_s0 = inlined_call_operand.vmem [shape: f32[2,8,256], index: 0, kind: input, shape index: {}]   ;;  %s1398_s1 = inlined_call_operand.vmem [shape: f32[8,512], index: 1, kind: input, shape index: {}]   ;;  %s1399_s2 = inlined_call_operand.vmem [shape: f32[8,8], index: 2, kind: input, shape index: {}]   ;;  %s1400_s3 = inlined_call_operand.vmem [shape: f32[8,1], index: 3, kind: input, shape index: {}]   ;;  %s1401_s4 = inlined_call_operand.vmem [shape: f32[9,8,1], index: 4, kind: input, shape index: {}]   ;;  %s1402_s5 = inlined_call_operand.vmem [shape: f32[8,1], index: 5, kind: input, shape index: {}]   ;;  %s1403_s6 = inlined_call_operand.vmem [shape: f32[8,8], index: 6, kind: input, shape index: {}]   ;;  %s1404_s7 = inlined_call_operand.vmem [shape: f32[8,1], index: 7, kind: input, shape index: {}]   ;;  %s1405_s8 = inlined_call_operand.vmem [shape: f32[9,1,256], index: 8, kind: input, shape index: {}]   ;;  %s1406_s9 = inlined_call_operand.hbm [shape: f32[2,8,512], index: 9, kind: output, shape index: {}]  }
   0x1   :  { %16 = vsyncpa [#allocation4 + $0x1], 0  ;;  %s1137_s30 = smov 0   ;;  %s1139_s10 = smov 0  }
   0x2   :  { %s1141_s11 = smov 0   ;;  %s1143_s12 = smov 0  }
   0x3 LB: > { %s1158_s13 = sadd.s32 4294967295, %s1074_s12   ;;  %s925_s14 = sadd.s32 4294967294, %s1074_s12   ;;  %s1074_s12 = sphi %s1143_s12, %s1412_s12   ;;  %s1070_s11 = sphi %s1141_s11, %s1411_s11   ;;  %s1066_s10 = sphi %s1139_s10, %s1410_s10   ;;  %s1062_s30 = sphi %s1137_s30, %s1409_s30  }
   0x4   : > { %s1162_s15 = sadd.s32 1, %s1074_s12   ;;  %s202_s16 = sadd.s32 1, %s1070_s11 }
   0x5   : > { %s199_s17 = ssub.s32 %s1074_s12, %s1162_s15  ;;  %p212_p0 = scmp.ne.s32.totalorder %s1070_s11, %s1066_s10 }
   0x6   : > { %p200_p1 = scmp.eq.s32.totalorder %s199_s17, 0  ;;  %p213_p2 = scmp.eq.s32.totalorder %s1158_s13, 1 }
   0x7   : > { %p218_p3 = scmp.ne.s32.totalorder %s1066_s10, %s1062_s30  ;;  %p219_p4 = scmp.eq.s32.totalorder %s925_s14, 1 }
   0x8   : > { %s1173_s18 = scalar_select %p200_p1, %s1070_s11, %s202_s16  }
   0x9   : > { %p1175_p5 = por %p213_p2, %p212_p0  ;;  %p1179_p6 = por %p219_p4, %p218_p3 }
   0xa   : > { %p928_p7 = scmp.ge.s32.totalorder %s1074_s12, 1  ;;  %p267_p8 = scmp.lt.s32.totalorder %s1074_s12, 3 }
   0xc   : > { %p268_p9 = pnand %p928_p7, %p267_p8 }
   0xd   : > { %s298_s21 = sand.u32 (!%p268_p9), 1, %s1066_s10   ;;  %s930_s22 = sshll.u32 (!%p268_p9), %s1158_s13, 1 }
   0xe   : > { %271 = sbr.rel (%p268_p9) target bundleno = 650 (0x28a), region = 52  ;;  %s929_s23 = sshll.u32 (!%p268_p9), %s298_s21, 5 }
   0xf   : > { %p302_p10 = scmp.lt.s32.totalorder (!%p268_p9), %s930_s22, 3  ;;  %s957_s24 = sshll.u32 (!%p268_p9), %s1158_s13, 4 }
  0x10   : > { %s309_s27 = scalar_lea.vmem (!%p268_p9), %s1397_s0, %s957_s24  ;;  %s1196_s17 = scalar_lea.vmem (!%p268_p9), [#allocation3], %s929_s23 }
  0x11   : > { %v342_v0 = vld [vmem:[%s309_s27] sm:$0xff] (!%p268_p9)  ;;  %v344_v1 = vld [vmem:[%s309_s27 + $0x8] sm:$0xff] (!%p268_p9) }
  0x12   : > { %343 = vst [vmem:[%s1196_s17] sm:$0xff] (!%p268_p9), %v342_v0  ;;  %345 = vst [vmem:[%s1196_s17 + $0x8] sm:$0xff] (!%p268_p9), %v344_v1 }
  0x15   : > { %s1414_s22 = smov (!%p302_p10, %s930_s22), 3 }
  0x16   : > { %s931_s28 = sshll.u32 %s1414_s22, 3 }
  0x17   : > { %s305_s16 = scalar_lea.vmem %s1398_s1, %s931_s28 }
  0x18   : > { %353 = vsyncadd [#allocation2], 256  ;;  %v355_v2 = vld [vmem:[%s305_s16 + $0x8] sm:$0xff]  ;;  %v354_v3 = vld [vmem:[%s305_s16] sm:$0xff]  ;;  %vm363_vm0 = vcmask 64512   ;;  %v1076_v4 = vmov 0.0   ;;  %v463_v37 = vlaneseq }
  0x19   : > { %367 = vmatprep.subr.mxu0 %v355_v2  ;;  %431 = vmatprep.mubr.f32.mxu0 %v1076_v4  ;;  %v356_v5 = vld [vmem:[%s1399_s2] sm:$0xff]  ;;  %v1077_v7 = vmov 0   ;;  %v937_v10 = vld [vmem:[%s1401_s4 + $0x8] sm:$0xff]  ;;  %v939_v11 = vld [vmem:[%s1401_s4 + $0x10] sm:$0xff]  ;;  %s1078_s25 = smov 16   ;;  %s1079_s26 = smov 17  }
  0x1a   : > { %v357_v6 = vld [vmem:[%s1400_s3] sm:$0xff]  ;;  %368 = vmatpush1.msra.mxu0 %v354_v3  ;;  %1008 = vset.pattern.permute.xlu0 %v1077_v7  ;;  %v941_v12 = vld [vmem:[%s1401_s4 + $0x18] sm:$0xff]  ;;  %v943_v13 = vld [vmem:[%s1401_s4 + $0x28] sm:$0xff]  ;;  %s1080_s23 = smov 1   ;;  %s1081_s27 = smov 15   ;;  %v464_v40 = vshrl.u32 %v463_v37, 7 }
  0x1b   : > { %934 = vmatmul.mubr.msk.f32.vlgmr.msra.gmra.mrb[0].mxu0 %vm363_vm0, %v356_v5  ;;  %360 = vperm.xlu0 %1008, %v357_v6   ;;  %v475_v8 = vld [vmem:[%s1401_s4] sm:$0xff]  ;;  %v945_v14 = vld [vmem:[%s1401_s4 + $0x30] sm:$0xff]  ;;  %v947_v15 = vld [vmem:[%s1401_s4 + $0x38] sm:$0xff]  ;;  %s1082_s28 = smov 127   ;;  %s1083_s29 = smov 113   ;;  %vm490_vm1 = vcmask 130048  }
  0x1c   : > { %v935_v9 = vld [vmem:[%s1401_s4 + $0x20] sm:$0xff]  ;;  %1009 = vset.pattern.permute.xlu1 %v1077_v7  ;;  %819 = vmatprep.mubr.f32.mxu1 %v1076_v4  ;;  %s1084_s14 = smov 112   ;;  %s1085_s16 = smov 111   ;;  %v1274_v43 = vsub.s32 0, %v464_v40  ;;  %v1276_v44 = vsub.s32 1, %v464_v40  ;;  %vm456_vm2 = vcmask 138240  }
  0x1d   : > { %478 = vperm.xlu1 %1009, %v475_v8   ;;  %v949_v16 = vld [vmem:[%s1401_s4 + $0x40] sm:$0xff]  ;;  %vm562_vm3 = vcmask 7168   ;;  %vm526_vm4 = vcmask 121856   ;;  %vm597_vm5 = vcmask 1039360   ;;  %vm633_vm6 = vcmask 924672  }
  0x1e   : > { %v737_v24 = vld [vmem:[%s1402_s5] sm:$0xff]  ;;  %vm669_vm7 = vcmask 916480   ;;  %vm705_vm8 = vcmask 908288  }
  0x1f   : > { %444 = vperm.xlu0 %1008, %v935_v9   ;;  %v746_v25 = vld [vmem:[%s1404_s7] sm:$0xff] }
  0x20   : > { %v936_v45 = vld [vmem:[%s1405_s8 + $0x2] sm:$0x3]  ;;  %v461_v46 = vld [vmem:[%s1405_s8] sm:$0x3]  ;;  %v938_v55 = vld [vmem:[%s1405_s8 + $0x4] sm:$0x3] }
  0x21   : > { %514 = vperm.xlu1 %1009, %v937_v10   ;;  %v501_v49 = vrot.slane %v936_v45, %v1274_v43  ;;  %v505_v50 = vrot.slane %v936_v45, %v1276_v44  ;;  %v466_v53 = vrot.slane %v461_v46, %v1274_v43  ;;  %v470_v54 = vrot.slane %v461_v46, %v1276_v44  ;;  %v940_v58 = vld [vmem:[%s1405_s8 + $0x6] sm:$0x3]  ;;  %v946_v46 = vld [vmem:[%s1405_s8 + $0xe] sm:$0x3] }
  0x22   : > { %v537_v2 = vrot.slane %v938_v55, %v1274_v43  ;;  %v541_v3 = vrot.slane %v938_v55, %v1276_v44  ;;  %v573_v5 = vrot.slane %v940_v58, %v1274_v43  ;;  %v577_v6 = vrot.slane %v940_v58, %v1276_v44 }
  0x23   : > { %550 = vperm.xlu0 %1008, %v939_v11   ;;  %v685_v55 = vrot.slane %v946_v46, %v1276_v44 }
  0x25   : > { %586 = vperm.xlu1 %1009, %v941_v12   ;;  %v942_v12 = vld [vmem:[%s1405_s8 + $0xa] sm:$0x3] }
  0x27   : > { %622 = vperm.xlu0 %1008, %v943_v13  }
  0x29   : > { %658 = vperm.xlu1 %1009, %v945_v14  }
  0x2b   : > { %694 = vperm.xlu0 %1008, %v947_v15  }
  0x2d   : > { %730 = vperm.xlu1 %1009, %v949_v16  }
  0x9a   : > { %v361_v17 = vpop.permute.xlu0 %360 }
  0x9c   : > { %v479_v26 = vpop.permute.xlu1 %478 }
  0x9e   : > { %v445_v27 = vpop.permute.xlu0 %444 }
  0xa0   : > { %v515_v28 = vpop.permute.xlu1 %514 }
  0xa2   : > { %v1260_v29 = vpop.permute.xlu0 %550 }
  0xa4   : > { %v1262_v30 = vpop.permute.xlu1 %586 }
  0xa6   : > { %v1264_v31 = vpop.permute.xlu0 %622 }
  0xa8   : > { %v1266_v32 = vpop.permute.xlu1 %658 }
  0xaa   : > { %v1268_v33 = vpop.permute.xlu0 %694 }
  0xac   : > { %v1270_v34 = vpop.permute.xlu1 %730 }
  0xee   : > { %v433_v18 = vpop.f32.mrb[0].mxu0 }
  0xef   : > { %v434_v19 = vadd.f32 %v433_v18, %v361_v17  ;;  %v435_v20 = vpop.f32.mrb[1].mxu0 }
  0xf0   : > { %v436_v22 = vadd.f32 %v435_v20, %v361_v17 }
  0xf1   : > { %v1234_v21 = vmax.f32 %v434_v19, 0.0 }
  0xf2   : > { %v1242_v23 = vmax.f32 %v436_v22, 0.0 }
  0xf3   : > { %488 = vrot.lane.b32.xlu0 %v1234_v21, %s1078_s25  ;;  %454 = vrot.lane.b32.xlu1 %v1234_v21, %s1079_s26  ;;  %v447_v57 = vmul.f32 %v445_v27, %v1234_v21 }
  0xf4   : > { %v448_v4 = vmul.f32 %v445_v27, %v1242_v23 }
  0xf7   : > { %560 = vrot.lane.b32.xlu0 %v1234_v21, %s1080_s23  ;;  %524 = vrot.lane.b32.xlu1 %v1234_v21, %s1081_s27 }
  0xfb   : > { %593 = vrot.lane.b32.xlu0 %v1234_v21, %s1082_s28  ;;  %629 = vrot.lane.b32.xlu1 %v1234_v21, %s1083_s29 }
  0xff   : > { %665 = vrot.lane.b32.xlu0 %v1234_v21, %s1084_s14  ;;  %485 = vrot.lane.b32.xlu1 %v1242_v23, %s1078_s25 }
 0x103   : > { %450 = vrot.lane.b32.xlu0 %v1242_v23, %s1079_s26  ;;  %557 = vrot.lane.b32.xlu1 %v1242_v23, %s1080_s23 }
 0x107   : > { %521 = vrot.lane.b32.xlu0 %v1242_v23, %s1081_s27  ;;  %595 = vrot.lane.b32.xlu1 %v1242_v23, %s1082_s28 }
 0x10b   : > { %701 = vrot.lane.b32.xlu0 %v1234_v21, %s1085_s16  ;;  %667 = vrot.lane.b32.xlu1 %v1242_v23, %s1084_s14 }
 0x10f   : > { %631 = vrot.lane.b32.xlu0 %v1242_v23, %s1083_s29  ;;  %703 = vrot.lane.b32.xlu1 %v1242_v23, %s1085_s16 }
 0x113   : > { %740 = vperm.xlu0 %1008, %v737_v24   ;;  %749 = vperm.xlu1 %1009, %v746_v25   ;;  %v609_v24 = vrot.slane %v942_v12, %v1274_v43  ;;  %v613_v25 = vrot.slane %v942_v12, %v1276_v44 }
 0x165   : > { %v489_v35 = vpop.permute.xlu0 %488  ;;  %v455_v36 = vpop.permute.xlu1 %454 }
 0x169   : > { %v561_v38 = vpop.permute.xlu0 %560  ;;  %v525_v39 = vpop.permute.xlu1 %524 }
 0x16d   : > { %v594_v41 = vpop.permute.xlu0 %593  ;;  %v1272_v42 = vpop.permute.xlu1 %629 }
 0x171   : > { %v1284_v47 = vpop.permute.xlu0 %665  ;;  %v486_v48 = vpop.permute.xlu1 %485 }
 0x172   : > { %v491_v51 = vsel %vm490_vm1, %v489_v35, %v486_v48  ;;  %v494_v52 = vsel %vm490_vm1, %v486_v48, %v489_v35 }
 0x173   : > { %v508_v60 = vmul.f32 %v501_v49, %v494_v52  ;;  %v509_v61 = vmul.f32 %v505_v50, %v491_v51 }
 0x175   : > { %v451_v56 = vpop.permute.xlu0 %450  ;;  %v558_v59 = vpop.permute.xlu1 %557  ;;  %v517_v14 = vmul.f32 %v515_v28, %v508_v60  ;;  %v518_v15 = vmul.f32 %v515_v28, %v509_v61 }
 0x176   : > { %v457_v62 = vsel %vm456_vm2, %v455_v36, %v451_v56  ;;  %v460_v63 = vsel %vm456_vm2, %v451_v56, %v455_v36  ;;  %v563_v9 = vsel %vm562_vm3, %v561_v38, %v558_v59  ;;  %v566_v10 = vsel %vm562_vm3, %v558_v59, %v561_v38 }
 0x177   : > { %v473_v0 = vmul.f32 %v466_v53, %v460_v63  ;;  %v474_v1 = vmul.f32 %v470_v54, %v457_v62  ;;  %v580_v22 = vmul.f32 %v573_v5, %v566_v10  ;;  %v581_v23 = vmul.f32 %v577_v6, %v563_v9 }
 0x178   : > { %v681_v54 = vrot.slane %v946_v46, %v1274_v43 }
 0x179   : > { %v481_v7 = vmul.f32 %v479_v26, %v473_v0  ;;  %v482_v8 = vmul.f32 %v479_v26, %v474_v1  ;;  %v522_v11 = vpop.permute.xlu0 %521  ;;  %v596_v13 = vpop.permute.xlu1 %595  ;;  %v944_v26 = vld [vmem:[%s1405_s8 + $0xc] sm:$0x3]  ;;  %v590_v51 = vmul.f32 %v1262_v30, %v581_v23 }
 0x17a   : > { %v527_v16 = vsel %vm526_vm4, %v525_v39, %v522_v11  ;;  %v530_v17 = vsel %vm526_vm4, %v522_v11, %v525_v39  ;;  %v598_v38 = vsel %vm597_vm5, %v594_v41, %v596_v13  ;;  %v602_v39 = vsel %vm597_vm5, %v596_v13, %v594_v41 }
 0x17b   : > { %v483_v18 = vadd.f32 %v481_v7, %v447_v57  ;;  %v484_v19 = vadd.f32 %v482_v8, %v448_v4  ;;  %v544_v20 = vmul.f32 %v537_v2, %v530_v17  ;;  %v545_v21 = vmul.f32 %v541_v3, %v527_v16 }
 0x17c   : > { %v645_v49 = vrot.slane %v944_v26, %v1274_v43  ;;  %v649_v50 = vrot.slane %v944_v26, %v1276_v44  ;;  %v616_v52 = vmul.f32 %v609_v24, %v598_v38  ;;  %v617_v53 = vmul.f32 %v613_v25, %v602_v39 }
 0x17d   : > { %v519_v27 = vadd.f32 %v517_v14, %v483_v18  ;;  %v520_v28 = vadd.f32 %v518_v15, %v484_v19  ;;  %v553_v35 = vmul.f32 %v1260_v29, %v544_v20  ;;  %v554_v36 = vmul.f32 %v1260_v29, %v545_v21  ;;  %v702_v37 = vpop.permute.xlu0 %701  ;;  %v668_v48 = vpop.permute.xlu1 %667 }
 0x17e   : > { %v589_v29 = vmul.f32 %v1262_v30, %v580_v22  ;;  %v948_v30 = vld [vmem:[%s1405_s8 + $0x10] sm:$0x3]  ;;  %v670_v62 = vsel %vm669_vm7, %v1284_v47, %v668_v48  ;;  %v674_v63 = vsel %vm669_vm7, %v668_v48, %v1284_v47  ;;  %v625_v0 = vmul.f32 %v1264_v31, %v616_v52  ;;  %v745_v22 = vld [vmem:[%s1403_s6] sm:$0xff] }
 0x17f   : > { %v555_v40 = vadd.f32 %v553_v35, %v519_v27  ;;  %v556_v45 = vadd.f32 %v554_v36, %v520_v28  ;;  %v626_v1 = vmul.f32 %v1264_v31, %v617_v53  ;;  %v717_v4 = vrot.slane %v948_v30, %v1274_v43 }
 0x180   : > { %v721_v5 = vrot.slane %v948_v30, %v1276_v44  ;;  %v688_v8 = vmul.f32 %v681_v54, %v670_v62  ;;  %v689_v9 = vmul.f32 %v685_v55, %v674_v63 }
 0x181   : > { %v632_v41 = vpop.permute.xlu0 %631  ;;  %v592_v58 = vadd.f32 %v590_v51, %v556_v45  ;;  %v591_v59 = vadd.f32 %v589_v29, %v555_v40  ;;  %v704_v3 = vpop.permute.xlu1 %703 }
 0x182   : > { %v634_v56 = vsel %vm633_vm6, %v1272_v42, %v632_v41  ;;  %v638_v57 = vsel %vm633_vm6, %v632_v41, %v1272_v42  ;;  %v706_v10 = vsel %vm705_vm8, %v702_v37, %v704_v3  ;;  %v710_v47 = vsel %vm705_vm8, %v704_v3, %v702_v37 }
 0x183   : > { %v652_v60 = vmul.f32 %v645_v49, %v634_v56  ;;  %v653_v61 = vmul.f32 %v649_v50, %v638_v57  ;;  %v627_v6 = vadd.f32 %v625_v0, %v591_v59  ;;  %v628_v7 = vadd.f32 %v626_v1, %v592_v58 }
 0x184   : > { %v697_v13 = vmul.f32 %v1268_v33, %v688_v8  ;;  %v698_v31 = vmul.f32 %v1268_v33, %v689_v9  ;;  %v724_v14 = vmul.f32 %v717_v4, %v706_v10  ;;  %v725_v15 = vmul.f32 %v721_v5, %v710_v47 }
 0x185   : > { %v661_v42 = vmul.f32 %v1266_v32, %v652_v60  ;;  %v662_v2 = vmul.f32 %v1266_v32, %v653_v61 }
 0x186   : > { %v733_v43 = vmul.f32 %v1270_v34, %v724_v14  ;;  %v734_v44 = vmul.f32 %v1270_v34, %v725_v15 }
 0x187   : > { %v663_v11 = vadd.f32 %v661_v42, %v627_v6  ;;  %v664_v12 = vadd.f32 %v662_v2, %v628_v7 }
 0x189   : > { %v699_v32 = vadd.f32 %v697_v13, %v663_v11  ;;  %v700_v16 = vadd.f32 %v698_v31, %v664_v12 }
 0x18b   : > { %v735_v17 = vadd.f32 %v733_v43, %v699_v32  ;;  %v736_v18 = vadd.f32 %v734_v44, %v700_v16 }
 0x192   : > { %v741_v19 = vpop.permute.xlu0 %740  ;;  %v750_v33 = vpop.permute.xlu1 %749 }
 0x193   : > { %v743_v20 = vadd.f32 %v741_v19, %v735_v17  ;;  %v744_v21 = vadd.f32 %v741_v19, %v736_v18 }
 0x195   : > { %755 = vmatprep.subr.mxu1 %v744_v21 }
 0x196   : > { %756 = vmatpush1.msra.mxu1 %v743_v20 }
 0x197   : > { %950 = vmatmul.mubr.msk.f32.vlgmr.msra.gmra.mrb[0].mxu1 %vm363_vm0, %v745_v22 }
 0x26a   : > { %v821_v23 = vpop.f32.mrb[0].mxu1 }
 0x26b   : > { %v822_v24 = vadd.f32 %v821_v23, %v750_v33  ;;  %v823_v25 = vpop.f32.mrb[1].mxu1 }
 0x26c   : > { %v824_v34 = vadd.f32 %v823_v25, %v750_v33 }
 0x26d   : > { %v826_v26 = vmax.f32 %v822_v24, 0.0 }
 0x26e   : > { %v827_v27 = vmax.f32 %v824_v34, 0.0 }
 0x26f   : > { %828 = vst [vmem:[%s1196_s17 + $0x10] sm:$0xff] %v826_v26 }
 0x270   : > { %829 = vst [vmem:[%s1196_s17 + $0x18] sm:$0xff] %v827_v27 }
 0x271   : > { %1054 = dma.done.wait [#allocation2], 256 }
 0x272   : > { %1055 = vsyncadd [#allocation2], 4294967040  ;;  %s958_s25 = sshll.u32 %s1158_s13, 9  ;;  %s850_s28 = sshll.u32 %s1196_s17, 4  ;;  %s851_s28 = int_to_ptr.vmem [resolvable:$true] %s850_s28 }
 0x273   : > { %s1358_s27 = scalar_lea.hbm %s1406_s9, %s958_s25  ;;  %s836_s29 = scalar_lea.sflag [#allocation4], %s298_s21 }
 0x274   : > { %s1010_s14 = scalar_lea.vmem %s851_s28, 512  ;;  %s1086_s16 = smov [#allocation3]  }
 0x275   : > { %p1011_p11 = scmp.ne.s32.totalorder %s851_s28, %s1010_s14  ;;  %s1014_s22 = sshll.u32 %s1086_s16, 4  ;;  %s1015_s22 = int_to_ptr.vmem [resolvable:$false] %s1014_s22 }
 0x276   : > { %s1016_s24 = scalar_lea.vmem %s1015_s22, 1024  ;;  %p1017_p0 = scmp.lt.s32.totalorder %s851_s28, %s1015_s22 }
 0x277   : > { %p1012_p12 = pnand %p1011_p11, %p1175_p5  ;;  %p1018_p1 = scmp.lt.s32.totalorder %s1016_s24, %s1010_s14 }
 0x279   : > { %p1013_p13 = pneg %p1012_p12  ;;  %p1019_p2 = por %p1018_p1, %p1017_p0 }
 0x27b   : > { %p1020_p3 = pnand %p1019_p2, %p1013_p13 }
 0x27d   : > { %1023 = shalt.err (!%p1020_p3)
}
 0x27e   : > { %s1024_s13 = scalar_lea.hbm %s1358_s27, 512  ;;  %s1028_s25 = scalar_lea.hbm %s1406_s9, 1024 }
 0x27f   : > { %p1025_p4 = scmp.ne.s32.totalorder %s1358_s27, %s1024_s13  ;;  %p1029_p9 = scmp.lt.u32.totalorder %s1358_s27, %s1406_s9 }
 0x280   : > { %p1030_p10 = scmp.lt.u32.totalorder %s1028_s25, %s1024_s13  ;;  %p1032_p12 = scmp.lt.u32.totalorder %s1024_s13, %s1358_s27 }
 0x281   : > { %p1026_p7 = pnand %p1025_p4, %p1175_p5 }
 0x282   : > { %p1031_p11 = por %p1030_p10, %p1029_p9 }
 0x283   : > { %p1027_p8 = pneg %p1026_p7 }
 0x284   : > { %p1033_p13 = por %p1032_p12, %p1031_p11 }
 0x286   : > { %p1034_p0 = pnand %p1033_p13, %p1027_p8 }
 0x288   : > { %1037 = shalt.err (!%p1034_p0)
}
 0x289   : > { %959 = dma.vmem_to_hbm [thread:$0]  (%p1175_p5), %s851_s28, 512, %s1358_s27, %s836_s29  }
 0x28a PF: > { %p965_p1 = scmp.ge.s32.totalorder %s1074_s12, 2  ;;  %s862_s14 = sand.u32 1, %s1062_s30  }
 0x28b   : > { %s863_s16 = scalar_lea.sflag [#allocation4], %s862_s14 }
 0x28c   : > { %p962_p2 = pnand %p965_p1, %p1179_p6 }
 0x28e   : > { %1057 = dma.done.wait (!%p962_p2), %s863_s16, 512  }
 0x28f   : > { %1059 = vsyncadd (!%p962_p2), %s863_s16, 4294966784  ;;  %p19_p3 = scmp.ge.s32.totalorder %s1162_s15, 4   ;;  %s1409_s30 = smov %s1066_s10 }
 0x290   : > { %s1410_s10 = smov %s1070_s11  ;;  %s1411_s11 = smov %s1173_s18 }
 0x291   : > { %s1412_s12 = smov %s1162_s15  ;;  %21 = sbr.rel (!%p19_p3) target bundleno = 3 (0x3), region = 145 }
 0x298   :  { %868 = vsyncpa [#allocation4], 1 }
 0x299   :  { %870 = vsyncpa [#allocation4 + $0x1], 1 }
 0x29a   :  { %871 = vsyncmov [#allocation2] }
 0x29d   :  { %s872_s12 = vpop.sfrf %871 }
 0x29e   :  { %p956_p5 = scmp.ne.s32.totalorder %s872_s12, 0 }
 0x2a0   :  { %876 = shalt.err (%p956_p5)  }

</bundles_post_ra>
